<compile_context>
chip_gen: v7x
topology: tpu7x:2x2x1
jax: 0.10.0
libtpu: 0.0.40
codegen_flags: <defaults>
</compile_context>

<pallas_src>
import functools

import jax
import jax.numpy as jnp
from jax import lax
from jax.experimental import pallas as pl
from jax.experimental.pallas import tpu as pltpu


def _round_up(n, m):
    return ((n + m - 1) // m) * m


def _pick_batch_tile(batch, seq):
    """Largest divisor of `batch` such that bt*S <= 256 MXU rows (sublane-safe)."""
    if seq % 8 != 0:
        return 1
    target_rows = 256
    best = 1
    for bt in range(1, batch + 1):
        if batch % bt == 0 and bt * seq <= target_rows:
            best = bt
    return best


def _attn_kernel(x_ref, wqkv_ref, bqkv_ref, o_ref, *, bt, s, e_pad, mxu_dtype):
    x = x_ref[...]                                   # (bt, S, E_pad), native dtype
    w = wqkv_ref[...]                                # (E_pad, 3*E_pad), mxu_dtype
    b = bqkv_ref[...]                                # (1, 3*E_pad), f32

    # Fused Q/K/V projection: one wide MXU matmul over Bt*S rows, f32 accumulate.
    x2 = x.reshape(bt * s, e_pad).astype(mxu_dtype)
    qkv = jnp.dot(x2, w, preferred_element_type=jnp.float32) + b      # (bt*S, 3*E_pad) f32
    qkv = qkv.reshape(bt, s, 3 * e_pad)

    # Lane-aligned slices (multiples of 128).  1/sqrt(E) already folded into Wq/bq.
    q = qkv[:, :, 0 * e_pad:1 * e_pad]
    k = qkv[:, :, 1 * e_pad:2 * e_pad]
    v = qkv[:, :, 2 * e_pad:3 * e_pad]

    # Scaled dot-product scores, batched over the packed batch tile.
    scores = jnp.einsum("bqd,bkd->bqk", q.astype(mxu_dtype), k.astype(mxu_dtype),
                        preferred_element_type=jnp.float32)           # (bt, S, S)

    # Numerically stable softmax; normalisation happens AFTER the PV matmul so
    # the per-element multiply is (S, E_pad) instead of (S, S), and it is exact.
    m = jnp.max(scores, axis=-1, keepdims=True)
    e = jnp.exp(scores - m)
    denom = jnp.sum(e, axis=-1, keepdims=True)

    pv = jnp.einsum("bqk,bkd->bqd", e.astype(mxu_dtype), v.astype(mxu_dtype),
                    preferred_element_type=jnp.float32)                # (bt, S, E_pad)
    out = pv / denom
    o_ref[...] = out.astype(o_ref.dtype)


def prepare_qkv_params(wq, bq, wk, bk, wv, bv, *, mxu_dtype=None):
    """Build the fused, pre-transposed, lane-padded QKV weight/bias ONCE.

    wq/wk/wv are PyTorch-layout (out_features, in_features); bq/bk/bv are (E,).
    The 1/sqrt(E) attention scale is folded into Wq / bq here.
    """
    E = wq.shape[1]
    e_pad = _round_up(E, 128)
    scale = 1.0 / (E ** 0.5)
    if mxu_dtype is None:
        mxu_dtype = wq.dtype                    # keep native dtype (f32-safe default)

    def prep_w(w):
        wt = w.T.astype(mxu_dtype)              # (in, out)
        if e_pad == E:
            return wt
        return jnp.zeros((e_pad, e_pad), mxu_dtype).at[:E, :E].set(wt)

    def prep_b(bias):
        b32 = bias.astype(jnp.float32)
        if e_pad == E:
            return b32
        return jnp.zeros((e_pad,), jnp.float32).at[:E].set(b32)

    wqkv = jnp.concatenate([prep_w(wq * scale), prep_w(wk), prep_w(wv)], axis=1)
    bqkv = jnp.concatenate([prep_b(bq * scale), prep_b(bk), prep_b(bv)])[None, :]
    return {"wqkv": wqkv, "bqkv": bqkv, "embed_dim": E, "e_pad": e_pad,
            "mxu_dtype": mxu_dtype}


def self_attention(x, params):
    """x: (B, S, E); params from prepare_qkv_params()."""
    wqkv, bqkv = params["wqkv"], params["bqkv"]
    E, e_pad, mxu_dtype = params["embed_dim"], params["e_pad"], params["mxu_dtype"]
    B, S, E_in = x.shape
    assert E_in == E

    bt = _pick_batch_tile(B, S)

    # Skip the pad round-trip entirely when E is already lane-dense.
    if e_pad == E:
        x_in = x
    else:
        x_in = jnp.zeros((B, S, e_pad), x.dtype).at[:, :, :E].set(x)

    kernel = functools.partial(_attn_kernel, bt=bt, s=S, e_pad=e_pad,
                               mxu_dtype=mxu_dtype)

    # VMEM budget: resident weights + double-buffered x/out blocks + f32
    # intermediates, with headroom; clamp to [32 MiB, 64 MiB] so the limit is
    # valid across v5e/v6e (128 MiB) and v7x (64 MiB).
    rows = bt * S
    w_bytes = 3 * e_pad * e_pad * jnp.dtype(mxu_dtype).itemsize + 3 * e_pad * 4
    io_bytes = 2 * (2 * rows * e_pad * x.dtype.itemsize)
    interm_bytes = 3 * rows * 3 * e_pad * 4 + 3 * bt * S * S * 4
    budget = 2 * w_bytes + io_bytes + 2 * interm_bytes
    vmem_limit = int(min(64 * 2 ** 20, max(32 * 2 ** 20, budget)))

    def _call(single_buffer_weights):
        const_kw = {}
        if single_buffer_weights and hasattr(pl, "Buffered"):
            # Constant-index weight/bias blocks: double-buffering is wasted VMEM.
            const_kw = dict(pipeline_mode=pl.Buffered(1))
        grid_spec = pltpu.PrefetchScalarGridSpec(
            num_scalar_prefetch=0,
            grid=(B // bt,),
            in_specs=[
                pl.BlockSpec((bt, S, e_pad), lambda i: (i, 0, 0)),        # x batch tile
                pl.BlockSpec((e_pad, 3 * e_pad), lambda i: (0, 0), **const_kw),  # fused W
                pl.BlockSpec((1, 3 * e_pad), lambda i: (0, 0), **const_kw),      # fused bias
            ],
            out_specs=pl.BlockSpec((bt, S, e_pad), lambda i: (i, 0, 0)),
        )
        return pl.pallas_call(
            kernel,
            out_shape=jax.ShapeDtypeStruct((B, S, e_pad), x.dtype),
            grid_spec=grid_spec,
            compiler_params=pltpu.CompilerParams(
                dimension_semantics=("parallel",),
                vmem_limit_bytes=vmem_limit,
            ),
        )(x_in, wqkv, bqkv)

    try:
        out_pad = _call(True)
    except Exception:   # older JAX / interpret backends without pipeline_mode support
        out_pad = _call(False)

    return out_pad if e_pad == E else out_pad[:, :, :E]


def _reference(x, wq, bq, wk, bk, wv, bv):
    hp = lax.Precision.HIGHEST
    q = jnp.einsum("bse,oe->bso", x, wq, precision=hp) + bq
    k = jnp.einsum("bse,oe->bso", x, wk, precision=hp) + bk
    v = jnp.einsum("bse,oe->bso", x, wv, precision=hp) + bv
    scores = jnp.einsum("bqe,bke->bqk", q, k, precision=hp) / (x.shape[-1] ** 0.5)
    attn = jax.nn.softmax(scores, axis=-1)
    return jnp.einsum("bqk,bke->bqe", attn, v, precision=hp)


if __name__ == "__main__":
    B, S, E = 2, 8, 32  # batch, sequence length, embed_dim

    key = jax.random.PRNGKey(0)
    kx, kwq, kbq, kwk, kbk, kwv, kbv = jax.random.split(key, 7)

    x = jax.random.normal(kx, (B, S, E), dtype=jnp.float32)

    # Deterministic parameter init (mimics nn.Linear uniform(-1/sqrt(E), 1/sqrt(E)))
    bound = 1.0 / (E ** 0.5)
    wq = jax.random.uniform(kwq, (E, E), jnp.float32, -bound, bound)
    bq = jax.random.uniform(kbq, (E,), jnp.float32, -bound, bound)
    wk = jax.random.uniform(kwk, (E, E), jnp.float32, -bound, bound)
    bk = jax.random.uniform(kbk, (E,), jnp.float32, -bound, bound)
    wv = jax.random.uniform(kwv, (E, E), jnp.float32, -bound, bound)
    bv = jax.random.uniform(kbv, (E,), jnp.float32, -bound, bound)

    # Fused/padded/pre-transposed parameters are built once, outside the hot path.
    params = prepare_qkv_params(wq, bq, wk, bk, wv, bv)

    out = self_attention(x, params)
    out = jax.block_until_ready(out)

    ref = _reference(x, wq, bq, wk, bk, wv, bv)
    assert out.shape == (B, S, E)
    # Kernel math is exact f32 (no approximate reciprocal, no bf16 feeds), so
    # this passes with a wide margin; 2e-3 covers MXU accumulation-order noise.
    assert jnp.allclose(out, ref, atol=2e-3, rtol=2e-3), float(jnp.max(jnp.abs(out - ref)))

    print("KERNEL_OK")
</pallas_src>

<mosaic_0001>
module attributes {stable_mosaic.version = 11 : i64} {
  func.func @_attn_kernel(%arg0: i32, %arg1: memref<2x8x128xf32, #tpu.memory_space<vmem>>, %arg2: memref<128x384xf32, #tpu.memory_space<vmem>>, %arg3: memref<1x384xf32, #tpu.memory_space<vmem>>, %arg4: memref<2x8x128xf32, #tpu.memory_space<vmem>>) attributes {dimension_semantics = [#tpu.dimension_semantics<parallel>], iteration_bounds = array<i64: 1>, scalar_prefetch = 0 : i64, scratch_operands = 0 : i64, tpu.core_type = #tpu.core_type<tc>, window_params = [{transform_indices = @transform_0, window_bounds = array<i64: 2, 8, 128>}, {pipeline_mode = #tpu.pipeline_mode<synchronous>, transform_indices = @transform_1, window_bounds = array<i64: 128, 384>}, {pipeline_mode = #tpu.pipeline_mode<synchronous>, transform_indices = @transform_2, window_bounds = array<i64: 1, 384>}, {transform_indices = @transform_3, window_bounds = array<i64: 2, 8, 128>}]} {
    %c0 = arith.constant 0 : index
    %c0_0 = arith.constant 0 : index
    %c0_1 = arith.constant 0 : index
    %0 = vector.load %arg1[%c0, %c0_0, %c0_1] : memref<2x8x128xf32, #tpu.memory_space<vmem>>, vector<2x8x128xf32>
    %c0_2 = arith.constant 0 : index
    %c0_3 = arith.constant 0 : index
    %1 = vector.load %arg2[%c0_2, %c0_3] : memref<128x384xf32, #tpu.memory_space<vmem>>, vector<128x384xf32>
    %c0_4 = arith.constant 0 : index
    %c0_5 = arith.constant 0 : index
    %2 = vector.load %arg3[%c0_4, %c0_5] : memref<1x384xf32, #tpu.memory_space<vmem>>, vector<1x384xf32>
    %3 = vector.shape_cast %0 : vector<2x8x128xf32> to vector<16x128xf32>
    %cst = arith.constant dense<0.000000e+00> : vector<16x384xf32>
    %4 = tpu.matmul %3, %1, %cst {dimension_numbers = #tpu.dot_dimension_numbers<[1], [0], [0], [1], [0, 0, 1, 1], [], []>} : vector<16x128xf32>, vector<128x384xf32>, vector<16x384xf32> -> vector<16x384xf32>
    %5 = vector.broadcast %2 : vector<1x384xf32> to vector<16x384xf32>
    %6 = arith.addf %4, %5 : vector<16x384xf32>
    %7 = vector.shape_cast %6 : vector<16x384xf32> to vector<2x8x384xf32>
    %8 = vector.extract_strided_slice %7 {offsets = [0, 0, 0], sizes = [2, 8, 128], strides = [1, 1, 1]} : vector<2x8x384xf32> to vector<2x8x128xf32>
    %9 = vector.extract_strided_slice %7 {offsets = [0, 0, 128], sizes = [2, 8, 128], strides = [1, 1, 1]} : vector<2x8x384xf32> to vector<2x8x128xf32>
    %10 = vector.extract_strided_slice %7 {offsets = [0, 0, 256], sizes = [2, 8, 128], strides = [1, 1, 1]} : vector<2x8x384xf32> to vector<2x8x128xf32>
    "tpu.trace_start"() <{level = 10 : i32, message = "bqd,bkd->bqk"}> : () -> ()
    %cst_6 = arith.constant dense<0.000000e+00> : vector<2x8x8xf32>
    %11 = tpu.matmul %8, %9, %cst_6 {dimension_numbers = #tpu.dot_dimension_numbers<[2], [2], [1], [1], [0, 0, 0, 1, 1, 1], [0], [0]>} : vector<2x8x128xf32>, vector<2x8x128xf32>, vector<2x8x8xf32> -> vector<2x8x8xf32>
    "tpu.trace_stop"() : () -> ()
    %cst_7 = arith.constant dense<0xFF800000> : vector<2x8xf32>
    %12 = vector.multi_reduction <maximumf>, %11, %cst_7 [2] : vector<2x8x8xf32> to vector<2x8xf32>
    %13 = vector.shape_cast %12 : vector<2x8xf32> to vector<2x8x1xf32>
    %14 = vector.broadcast %13 : vector<2x8x1xf32> to vector<2x8x8xf32>
    %15 = arith.subf %11, %14 : vector<2x8x8xf32>
    %16 = math.exp %15 : vector<2x8x8xf32>
    %cst_8 = arith.constant dense<0.000000e+00> : vector<2x8xf32>
    %17 = vector.multi_reduction <add>, %16, %cst_8 [2] : vector<2x8x8xf32> to vector<2x8xf32>
    %18 = vector.shape_cast %17 : vector<2x8xf32> to vector<2x8x1xf32>
    "tpu.trace_start"() <{level = 10 : i32, message = "bqk,bkd->bqd"}> : () -> ()
    %cst_9 = arith.constant dense<0.000000e+00> : vector<2x8x128xf32>
    %19 = tpu.matmul %16, %10, %cst_9 {dimension_numbers = #tpu.dot_dimension_numbers<[2], [1], [1], [2], [0, 0, 0, 1, 1, 2], [0], [0]>} : vector<2x8x8xf32>, vector<2x8x128xf32>, vector<2x8x128xf32> -> vector<2x8x128xf32>
    "tpu.trace_stop"() : () -> ()
    %20 = vector.broadcast %18 : vector<2x8x1xf32> to vector<2x8x128xf32>
    %21 = arith.divf %19, %20 : vector<2x8x128xf32>
    %c0_10 = arith.constant 0 : index
    %c0_11 = arith.constant 0 : index
    %c0_12 = arith.constant 0 : index
    %22 = vector.load %arg4[%c0_10, %c0_11, %c0_12] : memref<2x8x128xf32, #tpu.memory_space<vmem>>, vector<2x8x128xf32>
    tpu.vector_store %arg4[%c0_10, %c0_11, %c0_12], %21 {strides = array<i32>} : memref<2x8x128xf32, #tpu.memory_space<vmem>>, vector<2x8x128xf32>,
    return
  }
  func.func @transform_0(%arg0: i32) -> (i32, i32, i32) {
    %c0_i32 = arith.constant 0 : i32
    %c0_i32_0 = arith.constant 0 : i32
    %c0_i32_1 = arith.constant 0 : i32
    return %arg0, %c0_i32, %c0_i32_0 : i32, i32, i32
  }
  func.func @transform_1(%arg0: i32) -> (i32, i32) {
    %c0_i32 = arith.constant 0 : i32
    %c0_i32_0 = arith.constant 0 : i32
    %c0_i32_1 = arith.constant 0 : i32
    return %c0_i32, %c0_i32_0 : i32, i32
  }
  func.func @transform_2(%arg0: i32) -> (i32, i32) {
    %c0_i32 = arith.constant 0 : i32
    %c0_i32_0 = arith.constant 0 : i32
    %c0_i32_1 = arith.constant 0 : i32
    return %c0_i32, %c0_i32_0 : i32, i32
  }
  func.func @transform_3(%arg0: i32) -> (i32, i32, i32) {
    %c0_i32 = arith.constant 0 : i32
    %c0_i32_0 = arith.constant 0 : i32
    %c0_i32_1 = arith.constant 0 : i32
    return %arg0, %c0_i32, %c0_i32_0 : i32, i32, i32
  }
}

module attributes {stable_mosaic.version = 11 : i64} {
  func.func @_attn_kernel(%arg0: i32, %arg1: memref<2x8x128xf32, #tpu.memory_space<vmem>>, %arg2: memref<128x384xf32, #tpu.memory_space<vmem>>, %arg3: memref<1x384xf32, #tpu.memory_space<vmem>>, %arg4: memref<2x8x128xf32, #tpu.memory_space<vmem>>) attributes {dimension_semantics = [#tpu.dimension_semantics<parallel>], iteration_bounds = array<i64: 1>, scalar_prefetch = 0 : i64, scratch_operands = 0 : i64, tpu.core_type = #tpu.core_type<tc>, window_params = [{transform_indices = @transform_0, window_bounds = array<i64: 2, 8, 128>}, {pipeline_mode = #tpu.pipeline_mode<synchronous>, transform_indices = @transform_1, window_bounds = array<i64: 128, 384>}, {pipeline_mode = #tpu.pipeline_mode<synchronous>, transform_indices = @transform_2, window_bounds = array<i64: 1, 384>}, {transform_indices = @transform_3, window_bounds = array<i64: 2, 8, 128>}]} {
    %c0 = arith.constant 0 : index
    %c0_0 = arith.constant 0 : index
    %c0_1 = arith.constant 0 : index
    %0 = vector.load %arg1[%c0, %c0_0, %c0_1] : memref<2x8x128xf32, #tpu.memory_space<vmem>>, vector<2x8x128xf32>
    %c0_2 = arith.constant 0 : index
    %c0_3 = arith.constant 0 : index
    %1 = vector.load %arg2[%c0_2, %c0_3] : memref<128x384xf32, #tpu.memory_space<vmem>>, vector<128x384xf32>
    %c0_4 = arith.constant 0 : index
    %c0_5 = arith.constant 0 : index
    %2 = vector.load %arg3[%c0_4, %c0_5] : memref<1x384xf32, #tpu.memory_space<vmem>>, vector<1x384xf32>
    %3 = vector.shape_cast %0 : vector<2x8x128xf32> to vector<16x128xf32>
    %cst = arith.constant dense<0.000000e+00> : vector<16x384xf32>
    %4 = tpu.matmul %3, %1, %cst {dimension_numbers = #tpu.dot_dimension_numbers<[1], [0], [0], [1], [0, 0, 1, 1], [], []>} : vector<16x128xf32>, vector<128x384xf32>, vector<16x384xf32> -> vector<16x384xf32>
    %5 = vector.broadcast %2 : vector<1x384xf32> to vector<16x384xf32>
    %6 = arith.addf %4, %5 : vector<16x384xf32>
    %7 = vector.shape_cast %6 : vector<16x384xf32> to vector<2x8x384xf32>
    %8 = vector.extract_strided_slice %7 {offsets = [0, 0, 0], sizes = [2, 8, 128], strides = [1, 1, 1]} : vector<2x8x384xf32> to vector<2x8x128xf32>
    %9 = vector.extract_strided_slice %7 {offsets = [0, 0, 128], sizes = [2, 8, 128], strides = [1, 1, 1]} : vector<2x8x384xf32> to vector<2x8x128xf32>
    %10 = vector.extract_strided_slice %7 {offsets = [0, 0, 256], sizes = [2, 8, 128], strides = [1, 1, 1]} : vector<2x8x384xf32> to vector<2x8x128xf32>
    "tpu.trace_start"() <{level = 10 : i32, message = "bqd,bkd->bqk"}> : () -> ()
    %cst_6 = arith.constant dense<0.000000e+00> : vector<2x8x8xf32>
    %11 = tpu.matmul %8, %9, %cst_6 {dimension_numbers = #tpu.dot_dimension_numbers<[2], [2], [1], [1], [0, 0, 0, 1, 1, 1], [0], [0]>} : vector<2x8x128xf32>, vector<2x8x128xf32>, vector<2x8x8xf32> -> vector<2x8x8xf32>
    "tpu.trace_stop"() : () -> ()
    %cst_7 = arith.constant dense<0xFF800000> : vector<2x8xf32>
    %12 = vector.multi_reduction <maximumf>, %11, %cst_7 [2] : vector<2x8x8xf32> to vector<2x8xf32>
    %13 = vector.shape_cast %12 : vector<2x8xf32> to vector<2x8x1xf32>
    %14 = vector.broadcast %13 : vector<2x8x1xf32> to vector<2x8x8xf32>
    %15 = arith.subf %11, %14 : vector<2x8x8xf32>
    %16 = math.exp %15 : vector<2x8x8xf32>
    %cst_8 = arith.constant dense<0.000000e+00> : vector<2x8xf32>
    %17 = vector.multi_reduction <add>, %16, %cst_8 [2] : vector<2x8x8xf32> to vector<2x8xf32>
    %18 = vector.shape_cast %17 : vector<2x8xf32> to vector<2x8x1xf32>
    "tpu.trace_start"() <{level = 10 : i32, message = "bqk,bkd->bqd"}> : () -> ()
    %cst_9 = arith.constant dense<0.000000e+00> : vector<2x8x128xf32>
    %19 = tpu.matmul %16, %10, %cst_9 {dimension_numbers = #tpu.dot_dimension_numbers<[2], [1], [1], [2], [0, 0, 0, 1, 1, 2], [0], [0]>} : vector<2x8x8xf32>, vector<2x8x128xf32>, vector<2x8x128xf32> -> vector<2x8x128xf32>
    "tpu.trace_stop"() : () -> ()
    %20 = vector.broadcast %18 : vector<2x8x1xf32> to vector<2x8x128xf32>
    %21 = arith.divf %19, %20 : vector<2x8x128xf32>
    %c0_10 = arith.constant 0 : index
    %c0_11 = arith.constant 0 : index
    %c0_12 = arith.constant 0 : index
    %22 = vector.load %arg4[%c0_10, %c0_11, %c0_12] : memref<2x8x128xf32, #tpu.memory_space<vmem>>, vector<2x8x128xf32>
    tpu.vector_store %arg4[%c0_10, %c0_11, %c0_12], %21 {strides = array<i32>} : memref<2x8x128xf32, #tpu.memory_space<vmem>>, vector<2x8x128xf32>,
    return
  }
  func.func @transform_0(%arg0: i32) -> (i32, i32, i32) {
    %c0_i32 = arith.constant 0 : i32
    %c0_i32_0 = arith.constant 0 : i32
    %c0_i32_1 = arith.constant 0 : i32
    return %arg0, %c0_i32, %c0_i32_0 : i32, i32, i32
  }
  func.func @transform_1(%arg0: i32) -> (i32, i32) {
    %c0_i32 = arith.constant 0 : i32
    %c0_i32_0 = arith.constant 0 : i32
    %c0_i32_1 = arith.constant 0 : i32
    return %c0_i32, %c0_i32_0 : i32, i32
  }
  func.func @transform_2(%arg0: i32) -> (i32, i32) {
    %c0_i32 = arith.constant 0 : i32
    %c0_i32_0 = arith.constant 0 : i32
    %c0_i32_1 = arith.constant 0 : i32
    return %c0_i32, %c0_i32_0 : i32, i32
  }
  func.func @transform_3(%arg0: i32) -> (i32, i32, i32) {
    %c0_i32 = arith.constant 0 : i32
    %c0_i32_0 = arith.constant 0 : i32
    %c0_i32_1 = arith.constant 0 : i32
    return %arg0, %c0_i32, %c0_i32_0 : i32, i32, i32
  }
}

</mosaic_0001>

<bundles_post_ra>
// kernel: tpu_custom_call.1
= control target key start
LH: loop header
LB: loop body
LE: loop exit
PB: predicated region body
PF: predicated region fallthrough
CT: control target
= control target key end

     0   :  { %8 = vsyncpa [#allocation3], 0  ;;  %s925_s0 = inlined_call_operand.hbm [shape: f32[2,8,128], index: 0, kind: input, shape index: {}]   ;;  %s926_s1 = inlined_call_operand.hbm [shape: f32[128,384], index: 1, kind: input, shape index: {}]   ;;  %s927_s2 = inlined_call_operand.vmem [shape: f32[1,384], index: 2, kind: input, shape index: {}]   ;;  %s928_s3 = inlined_call_operand.hbm [shape: f32[2,8,128], index: 3, kind: output, shape index: {}]  }
   0x1   :  { %9 = vsyncpa [#allocation6], 0 }
   0x2   :  { %10 = vsyncpa [#allocation4], 0  ;;  %s827_s12 = smov [#allocation2]   ;;  %s755_s16 = scalar_lea.hbm %s925_s0, 256 }
   0x3   :  { %s16_s13 = sshll.u32 %s827_s12, 4  ;;  %p756_p0 = scmp.ne.s32.totalorder %s925_s0, %s755_s16  ;;  %s17_s13 = int_to_ptr.vmem [resolvable:$true] %s16_s13 }
   0x4   :  { %p759_p1 = scmp.lt.u32.totalorder %s755_s16, %s925_s0 }
   0x6   :  { %p761_p2 = pnand %p759_p1, %p756_p0 }
   0x8   :  { %764 = shalt.err (!%p761_p2)
}
   0x9   :  { %s765_s21 = scalar_lea.vmem %s17_s13, 256  ;;  %p770_p4 = scmp.lt.s32.totalorder %s17_s13, %s17_s13 }
   0xa   :  { %p766_p3 = scmp.ne.s32.totalorder %s17_s13, %s765_s21  ;;  %p771_p5 = scmp.lt.s32.totalorder %s765_s21, %s765_s21 }
   0xc   :  { %p772_p6 = por %p771_p5, %p770_p4 }
   0xe   :  { %p773_p7 = pnand %p772_p6, %p766_p3 }
  0x10   :  { %776 = shalt.err (!%p773_p7)
}
  0x11   :  { %s828_s22 = smov 128   ;;  %s829_s23 = smov 8  }
  0x12   :  { %22 = dma.hbm_to_vmem [thread:$0]  %s925_s0, 256, %s17_s13, [#allocation3], %s828_s22, %s828_s22, %s829_s23  }
  0x13   :  { %s830_s26 = smov [#allocation5]   ;;  %s777_s30 = scalar_lea.hbm %s926_s1, 6144 }
  0x14   :  { %s28_s27 = sshll.u32 %s830_s26, 4  ;;  %p778_p8 = scmp.ne.s32.totalorder %s926_s1, %s777_s30  ;;  %s29_s27 = int_to_ptr.vmem [resolvable:$true] %s28_s27 }
  0x15   :  { %p781_p9 = scmp.lt.u32.totalorder %s777_s30, %s926_s1 }
  0x17   :  { %p783_p10 = pnand %p781_p9, %p778_p8 }
  0x19   :  { %786 = shalt.err (!%p783_p10)
}
  0x1a   :  { %s787_s8 = scalar_lea.vmem %s29_s27, 6144  ;;  %p792_p12 = scmp.lt.s32.totalorder %s29_s27, %s29_s27 }
  0x1b   :  { %p788_p11 = scmp.ne.s32.totalorder %s29_s27, %s787_s8  ;;  %p793_p13 = scmp.lt.s32.totalorder %s787_s8, %s787_s8 }
  0x1d   :  { %p794_p0 = por %p793_p13, %p792_p12 }
  0x1f   :  { %p795_p1 = pnand %p794_p0, %p788_p11 }
  0x21   :  { %798 = shalt.err (!%p795_p1)
}
  0x22   :  { %s831_s0 = smov 384   ;;  %s832_s9 = smov 24  }
  0x23   :  { %34 = dma.hbm_to_vmem [thread:$0]  %s926_s1, 6144, %s29_s27, [#allocation6], %s831_s0, %s831_s0, %s832_s9  }
  0x24   :  { %821 = dma.done.wait [#allocation3], 256  }
  0x25   :  { %822 = vsyncadd [#allocation3], 4294967040 }
  0x26   :  { %823 = dma.done.wait [#allocation6], 6144  }
  0x27   :  { %824 = vsyncadd [#allocation6], 4294961152  ;;  %v833_v0 = vmov 0.0   ;;  %v46_v1 = vld [vmem:[#allocation5 + $0x8] sm:$0xff]  ;;  %v49_v2 = vld [vmem:[#allocation5 + $0x20] sm:$0xff]  ;;  %vm834_vm0 = vmmov 0  }
  0x28   :  { %174 = vmatprep.mubr.f32.mxu0 %v833_v0  ;;  %v45_v3 = vld [vmem:[#allocation5] sm:$0xff]  ;;  %v674_v4 = vpack.c.bf16 %v49_v2, %v46_v1  ;;  %v48_v5 = vld [vmem:[#allocation5 + $0x18] sm:$0xff]  ;;  %v55_v7 = vld [vmem:[#allocation5 + $0x50] sm:$0xff]  ;;  %vm402_vm1 = vcmask 64512  }
  0x29   :  { %v52_v6 = vld [vmem:[#allocation5 + $0x38] sm:$0xff]  ;;  %v676_v8 = vpack.c.bf16 %v48_v5, %v45_v3  ;;  %v51_v10 = vld [vmem:[#allocation5 + $0x30] sm:$0xff]  ;;  %v54_v11 = vld [vmem:[#allocation5 + $0x48] sm:$0xff] }
  0x2a   :  { %v678_v9 = vpack.c.bf16 %v55_v7, %v52_v6  ;;  %v58_v12 = vld [vmem:[#allocation5 + $0x68] sm:$0xff]  ;;  %675 = vmatprep.subr.bf16.mxu0 %v674_v4  ;;  %v61_v13 = vld [vmem:[#allocation5 + $0x80] sm:$0xff]  ;;  %v680_v14 = vpack.c.bf16 %v54_v11, %v51_v10  ;;  %v60_v17 = vld [vmem:[#allocation5 + $0x78] sm:$0xff] }
  0x2b   :  { %677 = vmatpush1.bf16.msra.mxu0 %v676_v8  ;;  %v682_v15 = vpack.c.bf16 %v61_v13, %v58_v12  ;;  %v57_v16 = vld [vmem:[#allocation5 + $0x60] sm:$0xff]  ;;  %v64_v18 = vld [vmem:[#allocation5 + $0x98] sm:$0xff]  ;;  %v67_v19 = vld [vmem:[#allocation5 + $0xb0] sm:$0xff]  ;;  %v95_v12 = vlaneseq }
  0x2c   :  { %679 = vmatprep.subr.bf16.mxu0 %v678_v9  ;;  %v684_v20 = vpack.c.bf16 %v60_v17, %v57_v16  ;;  %v686_v21 = vpack.c.bf16 %v67_v19, %v64_v18  ;;  %v63_v22 = vld [vmem:[#allocation5 + $0x90] sm:$0xff]  ;;  %v66_v23 = vld [vmem:[#allocation5 + $0xa8] sm:$0xff]  ;;  %v73_v25 = vld [vmem:[#allocation5 + $0xe0] sm:$0xff] }
  0x2d   :  { %v70_v24 = vld [vmem:[#allocation5 + $0xc8] sm:$0xff]  ;;  %v884_v26 = vld [vmem:[#allocation2] sm:$0xff]  ;;  %v688_v29 = vpack.c.bf16 %v66_v23, %v63_v22  ;;  %v69_v30 = vld [vmem:[#allocation5 + $0xc0] sm:$0xff]  ;;  %v96_v13 = vshrl.u32 %v95_v12, 7 }
  0x2e   :  { %v47_v27 = vld [vmem:[#allocation5 + $0x10] sm:$0xff]  ;;  %v50_v28 = vld [vmem:[#allocation5 + $0x28] sm:$0xff]  ;;  %651 = vmatprep.mubr.f32.mxu1 %v884_v26  ;;  %v53_v32 = vld [vmem:[#allocation5 + $0x40] sm:$0xff]  ;;  %v690_v34 = vpack.c.bf16 %v73_v25, %v70_v24 }
  0x2f   :  { %681 = vmatpush1.bf16.msra.mxu0 %v680_v14  ;;  %v706_v31 = vpack.c.bf16 %v50_v28, %v47_v27  ;;  %v56_v33 = vld [vmem:[#allocation5 + $0x58] sm:$0xff]  ;;  %v59_v37 = vld [vmem:[#allocation5 + $0x70] sm:$0xff]  ;;  %v62_v38 = vld [vmem:[#allocation5 + $0x88] sm:$0xff]  ;;  %v101_v14 = vsub.s32 1, %v96_v13  ;;  %v97_v16 = vsub.s32 0, %v96_v13  ;;  %v105_v23 = vsub.s32 2, %v96_v13 }
  0x30   :  { %683 = vmatprep.subr.bf16.mxu0 %v682_v15  ;;  %v72_v35 = vld [vmem:[#allocation5 + $0xd8] sm:$0xff]  ;;  %v710_v36 = vpack.c.bf16 %v56_v33, %v53_v32  ;;  %v79_v40 = vld [vmem:[#allocation5 + $0x110] sm:$0xff]  ;;  %v714_v43 = vpack.c.bf16 %v62_v38, %v59_v37  ;;  %v78_v45 = vld [vmem:[#allocation5 + $0x108] sm:$0xff] }
  0x31   :  { %v76_v39 = vld [vmem:[#allocation5 + $0xf8] sm:$0xff]  ;;  %707 = vmatprep.subr.bf16.mxu1 %v706_v31  ;;  %v692_v41 = vpack.c.bf16 %v72_v35, %v69_v30  ;;  %v75_v42 = vld [vmem:[#allocation5 + $0xf0] sm:$0xff]  ;;  %v65_v46 = vld [vmem:[#allocation5 + $0xa0] sm:$0xff] }
  0x32   :  { %709 = vmatpush3.bf16.msra.mxu1 %v706_v31  ;;  %v694_v44 = vpack.c.bf16 %v79_v40, %v76_v39  ;;  %v68_v47 = vld [vmem:[#allocation5 + $0xb8] sm:$0xff]  ;;  %v82_v48 = vld [vmem:[#allocation5 + $0x128] sm:$0xff]  ;;  %v85_v49 = vld [vmem:[#allocation5 + $0x140] sm:$0xff]  ;;  %v696_v50 = vpack.c.bf16 %v78_v45, %v75_v42 }
  0x33   :  { %685 = vmatpush1.bf16.msra.mxu0 %v684_v20  ;;  %711 = vmatprep.subr.bf16.mxu1 %v710_v36  ;;  %v81_v51 = vld [vmem:[#allocation5 + $0x120] sm:$0xff]  ;;  %v718_v52 = vpack.c.bf16 %v68_v47, %v65_v46  ;;  %v698_v53 = vpack.c.bf16 %v85_v49, %v82_v48  ;;  %v84_v54 = vld [vmem:[#allocation5 + $0x138] sm:$0xff]  ;;  %v71_v55 = vld [vmem:[#allocation5 + $0xd0] sm:$0xff] }
  0x34   :  { %687 = vmatprep.subr.bf16.mxu0 %v686_v21  ;;  %v74_v56 = vld [vmem:[#allocation5 + $0xe8] sm:$0xff]  ;;  %v88_v57 = vld [vmem:[#allocation5 + $0x158] sm:$0xff]  ;;  %v91_v58 = vld [vmem:[#allocation5 + $0x170] sm:$0xff]  ;;  %v700_v59 = vpack.c.bf16 %v84_v54, %v81_v51 }
  0x35   :  { %v87_v60 = vld [vmem:[#allocation5 + $0x150] sm:$0xff]  ;;  %v722_v61 = vpack.c.bf16 %v74_v56, %v71_v55  ;;  %v702_v62 = vpack.c.bf16 %v91_v58, %v88_v57  ;;  %v90_v63 = vld [vmem:[#allocation5 + $0x168] sm:$0xff]  ;;  %v77_v1 = vld [vmem:[#allocation5 + $0x100] sm:$0xff] }
  0x36   :  { %713 = vmatpush3.bf16.msra.mxu1 %v710_v36  ;;  %v80_v2 = vld [vmem:[#allocation5 + $0x118] sm:$0xff]  ;;  %v704_v3 = vpack.c.bf16 %v90_v63, %v87_v60  ;;  %v83_v5 = vld [vmem:[#allocation5 + $0x130] sm:$0xff]  ;;  %v86_v6 = vld [vmem:[#allocation5 + $0x148] sm:$0xff] }
  0x37   :  { %689 = vmatpush1.bf16.msra.mxu0 %v688_v29  ;;  %715 = vmatprep.subr.bf16.mxu1 %v714_v43  ;;  %v726_v4 = vpack.c.bf16 %v80_v2, %v77_v1  ;;  %v730_v7 = vpack.c.bf16 %v86_v6, %v83_v5  ;;  %v89_v8 = vld [vmem:[#allocation5 + $0x160] sm:$0xff]  ;;  %v92_v9 = vld [vmem:[#allocation5 + $0x178] sm:$0xff]  ;;  %v93_v15 = vld [vmem:[%s927_s2] sm:$0x7]  ;;  %s835_s2 = smov [#allocation7]  }
  0x38   :  { %691 = vmatprep.subr.bf16.mxu0 %v690_v34  ;;  %v44_v10 = vld [vmem:[#allocation2 + $0x8] sm:$0xff]  ;;  %v734_v11 = vpack.c.bf16 %v92_v9, %v89_v8  ;;  %v102_v17 = vrot.slane %v93_v15, %v101_v14  ;;  %v98_v19 = vrot.slane %v93_v15, %v97_v16  ;;  %v106_v27 = vrot.slane %v93_v15, %v105_v23  ;;  %s578_s13 = sshll.u32 %s835_s2, 4  ;;  %s579_s13 = int_to_ptr.vmem [resolvable:$true] %s578_s13 }
  0x39   :  { %s799_s14 = scalar_lea.vmem %s579_s13, 256  ;;  %p804_p3 = scmp.lt.s32.totalorder %s579_s13, %s579_s13 }
  0x3a   :  { %717 = vmatpush3.bf16.msra.mxu1 %v714_v43  ;;  %p800_p2 = scmp.ne.s32.totalorder %s579_s13, %s799_s14  ;;  %p805_p4 = scmp.lt.s32.totalorder %s799_s14, %s799_s14 }
  0x3b   :  { %693 = vmatpush1.bf16.msra.mxu0 %v692_v41  ;;  %719 = vmatprep.subr.bf16.mxu1 %v718_v52 }
  0x3c   :  { %695 = vmatprep.subr.bf16.mxu0 %v694_v44  ;;  %p806_p5 = por %p805_p4, %p804_p3 }
  0x3e   :  { %721 = vmatpush3.bf16.msra.mxu1 %v718_v52  ;;  %p807_p6 = pnand %p806_p5, %p800_p2 }
  0x3f   :  { %697 = vmatpush1.bf16.msra.mxu0 %v696_v50  ;;  %723 = vmatprep.subr.bf16.mxu1 %v722_v61 }
  0x40   :  { %699 = vmatprep.subr.bf16.mxu0 %v698_v53 }
  0x42   :  { %725 = vmatpush3.bf16.msra.mxu1 %v722_v61 }
  0x43   :  { %701 = vmatpush1.bf16.msra.mxu0 %v700_v59  ;;  %727 = vmatprep.subr.bf16.mxu1 %v726_v4 }
  0x44   :  { %703 = vmatprep.subr.bf16.mxu0 %v702_v62 }
  0x46   :  { %729 = vmatpush3.bf16.msra.mxu1 %v726_v4 }
  0x47   :  { %705 = vmatpush1.bf16.msra.mxu0 %v704_v3  ;;  %731 = vmatprep.subr.bf16.mxu1 %v730_v7 }
  0x48   :  { %659 = vmatprep.subr.mxu0 %v833_v0 }
  0x4a   :  { %175 = vmatmul.mubr.f32.vlgmr.msra.gmra.mrb[0].mxu0 %v884_v26  ;;  %733 = vmatpush3.bf16.msra.mxu1 %v730_v7 }
  0x4b   :  { %180 = vmatprep.mubr.f32.mxu0 %v833_v0  ;;  %735 = vmatprep.subr.bf16.mxu1 %v734_v11 }
  0x4e   :  { %181 = vmatmul.mubr.f32.gmra.mrb[2].mxu0 %v44_v10  ;;  %737 = vmatpush3.bf16.msra.mxu1 %v734_v11 }
  0x4f   :  { %654 = vmatprep.subr.mxu1 %v833_v0  ;;  %661 = vmatprep.mubr.msk.f32.mxu0 %vm834_vm0, %v833_v0 }
  0x51   :  { %652 = vmatmul.mubr.f32.vlgmr.msra.gmra.mrb[0].mxu1 %v44_v10 }
  0x52   :  { %656 = vmatprep.mubr.msk.f32.mxu1 %vm834_vm0, %v833_v0 }
 0x11d   :  { %v176_v18 = vpop.f32.mrb[0].mxu0 }
 0x11e   :  { %v178_v20 = vpop.f32.mrb[1].mxu0  ;;  %v177_v24 = vadd.f32 %v176_v18, %v98_v19 }
 0x11f   :  { %v179_v21 = vadd.f32 %v178_v20, %v102_v17 }
 0x121   :  { %v182_v22 = vpop.f32.mrb[2].mxu0  ;;  %655 = vmatpush3.xpose.msra.mxu1 %v179_v21 }
 0x122   :  { %v184_v25 = vpop.f32.mrb[3].mxu0  ;;  %664 = vmatprep.subr.mxu1 %v833_v0  ;;  %v183_v28 = vadd.f32 %v182_v22, %v98_v19 }
 0x123   :  { %v185_v26 = vadd.f32 %v184_v25, %v102_v17 }
 0x124   :  { %657 = vmatmul.mubr.f32.vlgmr.msra.gmra.mrb[2].mxu1 %v177_v24  ;;  %v653_v29 = vpop.f32.mrb[0].mxu1 }
 0x125   :  { %660 = vmatpush3.xpose.msra.mxu0 %v185_v26  ;;  %666 = vmatprep.mubr.msk.f32.mxu1 %vm834_vm0, %v833_v0  ;;  %v259_v30 = vadd.f32 %v653_v29, %v106_v27  ;;  %v253_v31 = vpop.f32.mrb[1].mxu1 }
 0x126   :  { %669 = vmatprep.subr.mxu0 %v833_v0  ;;  %v254_v32 = vadd.f32 %v253_v31, %v106_v27 }
 0x128   :  { %662 = vmatmul.mubr.f32.vlgmr.msra.gmra.mrb[4].mxu0 %v183_v28  ;;  %665 = vmatpush3.msra.mxu1 %v254_v32 }
 0x129   :  { %671 = vmatprep.mubr.msk.f32.mxu0 %vm834_vm0, %v833_v0  ;;  %670 = vmatpush3.msra.mxu0 %v259_v30 }
 0x1f7   :  { %v328_v33 = vpop.f32.mrb[2].mxu1 }
 0x1f8   :  { %v658_v34 = vpop.f32.mrb[3].mxu1  ;;  %v403_v35 = vsel %vm402_vm1, %v328_v33, -inf }
 0x1f9   :  { %404 = vmax.xlane.f32.xlu0 %v403_v35 }
 0x1fb   :  { %v398_v36 = vpop.f32.mrb[4].mxu0 }
 0x1fc   :  { %v663_v37 = vpop.f32.mrb[5].mxu0  ;;  %v406_v38 = vsel %vm402_vm1, %v398_v36, -inf }
 0x1fd   :  { %407 = vmax.xlane.f32.xlu0 %v406_v38 }
 0x286   :  { %v405_v39 = vpop.xlane.xlu0 %404 }
 0x287   :  { %v409_v40 = vsub.f32 %v328_v33, %v405_v39 }
 0x289   :  { %v411_v41 = vmul.f32 1.442695, %v409_v40 }
 0x28a   :  { %v408_v42 = vpop.xlane.xlu0 %407 }
 0x28b   :  { %747 = vpow2.f32 %v411_v41  ;;  %v410_v0 = vsub.f32 %v398_v36, %v408_v42 }
 0x28d   :  { %v413_v43 = vmul.f32 1.442695, %v410_v0 }
 0x28f   :  { %749 = vpow2.f32 %v413_v43 }
 0x295   :  { %v748_v44 = vpop.eup %747 }
 0x296   :  { %667 = vmatmul.mubr.msk.f32.vlgmr.msra.gmra.mrb[4].mxu1 %vm402_vm1, %v748_v44  ;;  %v415_v45 = vsel %vm402_vm1, %v748_v44, 0.0 }
 0x297   :  { %416 = vadd.xlane.f32.xlu1 %v415_v45 }
 0x299   :  { %v750_v46 = vpop.eup %749 }
 0x29a   :  { %672 = vmatmul.mubr.msk.f32.vlgmr.msra.gmra.mrb[6].mxu0 %vm402_vm1, %v750_v46  ;;  %v418_v47 = vsel %vm402_vm1, %v750_v46, 0.0 }
 0x29b   :  { %419 = vadd.xlane.f32.xlu1 %v418_v47 }
 0x324   :  { %v417_v48 = vpop.xlane.xlu1 %416 }
 0x325   :  { %751 = vrcp.f32 %v417_v48 }
 0x328   :  { %v420_v49 = vpop.xlane.xlu1 %419 }
 0x329   :  { %753 = vrcp.f32 %v420_v49 }
 0x32f   :  { %v752_v50 = vpop.eup %751 }
 0x333   :  { %v754_v54 = vpop.eup %753 }
 0x369   :  { %v490_v51 = vpop.f32.mrb[4].mxu1 }
 0x36a   :  { %v568_v52 = vmul.f32 %v752_v50, %v490_v51  ;;  %v668_v53 = vpop.f32.mrb[5].mxu1 }
 0x36c   :  { %571 = vst [vmem:[#allocation7] sm:$0xff] %v568_v52 }
 0x36d   :  { %v563_v55 = vpop.f32.mrb[6].mxu0 }
 0x36e   :  { %v570_v56 = vmul.f32 %v754_v54, %v563_v55  ;;  %v673_v57 = vpop.f32.mrb[7].mxu0 }
 0x370   :  { %572 = vst [vmem:[#allocation7 + $0x8] sm:$0xff] %v570_v56 }
 0x371   :  { %810 = shalt.err (!%p807_p6)
}
 0x372   :  { %s811_s17 = scalar_lea.hbm %s928_s3, 256 }
 0x373   :  { %p812_p7 = scmp.ne.s32.totalorder %s928_s3, %s811_s17  ;;  %p815_p8 = scmp.lt.u32.totalorder %s811_s17, %s928_s3 }
 0x375   :  { %p817_p9 = pnand %p815_p8, %p812_p7 }
 0x377   :  { %820 = shalt.err (!%p817_p9)
}
 0x378   :  { %584 = dma.vmem_to_hbm [thread:$0]  %s579_s13, 256, %s928_s3, [#allocation4], %s828_s22, %s828_s22, %s829_s23  }
 0x379   :  { %825 = dma.done.wait [#allocation4], 256  }
 0x37a   :  { %826 = vsyncadd [#allocation4], 4294967040 }
 0x37b   :  { %588 = vsyncpa [#allocation3], 1 }
 0x37c   :  { %589 = vsyncpa [#allocation6], 1 }
 0x37d   :  { %590 = vsyncpa [#allocation4], 1 }

// kernel: tpu_custom_call.1
= control target key start
LH: loop header
LB: loop body
LE: loop exit
PB: predicated region body
PF: predicated region fallthrough
CT: control target
= control target key end

     0   :  { %8 = vsyncpa [#allocation3], 0  ;;  %s925_s0 = inlined_call_operand.hbm [shape: f32[2,8,128], index: 0, kind: input, shape index: {}]   ;;  %s926_s1 = inlined_call_operand.hbm [shape: f32[128,384], index: 1, kind: input, shape index: {}]   ;;  %s927_s2 = inlined_call_operand.vmem [shape: f32[1,384], index: 2, kind: input, shape index: {}]   ;;  %s928_s3 = inlined_call_operand.hbm [shape: f32[2,8,128], index: 3, kind: output, shape index: {}]  }
   0x1   :  { %9 = vsyncpa [#allocation6], 0 }
   0x2   :  { %10 = vsyncpa [#allocation4], 0  ;;  %s827_s12 = smov [#allocation2]   ;;  %s755_s16 = scalar_lea.hbm %s925_s0, 256 }
   0x3   :  { %s16_s13 = sshll.u32 %s827_s12, 4  ;;  %p756_p0 = scmp.ne.s32.totalorder %s925_s0, %s755_s16  ;;  %s17_s13 = int_to_ptr.vmem [resolvable:$true] %s16_s13 }
   0x4   :  { %p759_p1 = scmp.lt.u32.totalorder %s755_s16, %s925_s0 }
   0x6   :  { %p761_p2 = pnand %p759_p1, %p756_p0 }
   0x8   :  { %764 = shalt.err (!%p761_p2)
}
   0x9   :  { %s765_s21 = scalar_lea.vmem %s17_s13, 256  ;;  %p770_p4 = scmp.lt.s32.totalorder %s17_s13, %s17_s13 }
   0xa   :  { %p766_p3 = scmp.ne.s32.totalorder %s17_s13, %s765_s21  ;;  %p771_p5 = scmp.lt.s32.totalorder %s765_s21, %s765_s21 }
   0xc   :  { %p772_p6 = por %p771_p5, %p770_p4 }
   0xe   :  { %p773_p7 = pnand %p772_p6, %p766_p3 }
  0x10   :  { %776 = shalt.err (!%p773_p7)
}
  0x11   :  { %s828_s22 = smov 128   ;;  %s829_s23 = smov 8  }
  0x12   :  { %22 = dma.hbm_to_vmem [thread:$0]  %s925_s0, 256, %s17_s13, [#allocation3], %s828_s22, %s828_s22, %s829_s23  }
  0x13   :  { %s830_s26 = smov [#allocation5]   ;;  %s777_s30 = scalar_lea.hbm %s926_s1, 6144 }
  0x14   :  { %s28_s27 = sshll.u32 %s830_s26, 4  ;;  %p778_p8 = scmp.ne.s32.totalorder %s926_s1, %s777_s30  ;;  %s29_s27 = int_to_ptr.vmem [resolvable:$true] %s28_s27 }
  0x15   :  { %p781_p9 = scmp.lt.u32.totalorder %s777_s30, %s926_s1 }
  0x17   :  { %p783_p10 = pnand %p781_p9, %p778_p8 }
  0x19   :  { %786 = shalt.err (!%p783_p10)
}
  0x1a   :  { %s787_s8 = scalar_lea.vmem %s29_s27, 6144  ;;  %p792_p12 = scmp.lt.s32.totalorder %s29_s27, %s29_s27 }
  0x1b   :  { %p788_p11 = scmp.ne.s32.totalorder %s29_s27, %s787_s8  ;;  %p793_p13 = scmp.lt.s32.totalorder %s787_s8, %s787_s8 }
  0x1d   :  { %p794_p0 = por %p793_p13, %p792_p12 }
  0x1f   :  { %p795_p1 = pnand %p794_p0, %p788_p11 }
  0x21   :  { %798 = shalt.err (!%p795_p1)
}
  0x22   :  { %s831_s0 = smov 384   ;;  %s832_s9 = smov 24  }
  0x23   :  { %34 = dma.hbm_to_vmem [thread:$0]  %s926_s1, 6144, %s29_s27, [#allocation6], %s831_s0, %s831_s0, %s832_s9  }
  0x24   :  { %821 = dma.done.wait [#allocation3], 256  }
  0x25   :  { %822 = vsyncadd [#allocation3], 4294967040 }
  0x26   :  { %823 = dma.done.wait [#allocation6], 6144  }
  0x27   :  { %824 = vsyncadd [#allocation6], 4294961152  ;;  %v833_v0 = vmov 0.0   ;;  %v46_v1 = vld [vmem:[#allocation5 + $0x8] sm:$0xff]  ;;  %v49_v2 = vld [vmem:[#allocation5 + $0x20] sm:$0xff]  ;;  %vm834_vm0 = vmmov 0  }
  0x28   :  { %174 = vmatprep.mubr.f32.mxu0 %v833_v0  ;;  %v45_v3 = vld [vmem:[#allocation5] sm:$0xff]  ;;  %v674_v4 = vpack.c.bf16 %v49_v2, %v46_v1  ;;  %v48_v5 = vld [vmem:[#allocation5 + $0x18] sm:$0xff]  ;;  %v55_v7 = vld [vmem:[#allocation5 + $0x50] sm:$0xff]  ;;  %vm402_vm1 = vcmask 64512  }
  0x29   :  { %v52_v6 = vld [vmem:[#allocation5 + $0x38] sm:$0xff]  ;;  %v676_v8 = vpack.c.bf16 %v48_v5, %v45_v3  ;;  %v51_v10 = vld [vmem:[#allocation5 + $0x30] sm:$0xff]  ;;  %v54_v11 = vld [vmem:[#allocation5 + $0x48] sm:$0xff] }
  0x2a   :  { %v678_v9 = vpack.c.bf16 %v55_v7, %v52_v6  ;;  %v58_v12 = vld [vmem:[#allocation5 + $0x68] sm:$0xff]  ;;  %675 = vmatprep.subr.bf16.mxu0 %v674_v4  ;;  %v61_v13 = vld [vmem:[#allocation5 + $0x80] sm:$0xff]  ;;  %v680_v14 = vpack.c.bf16 %v54_v11, %v51_v10  ;;  %v60_v17 = vld [vmem:[#allocation5 + $0x78] sm:$0xff] }
  0x2b   :  { %677 = vmatpush1.bf16.msra.mxu0 %v676_v8  ;;  %v682_v15 = vpack.c.bf16 %v61_v13, %v58_v12  ;;  %v57_v16 = vld [vmem:[#allocation5 + $0x60] sm:$0xff]  ;;  %v64_v18 = vld [vmem:[#allocation5 + $0x98] sm:$0xff]  ;;  %v67_v19 = vld [vmem:[#allocation5 + $0xb0] sm:$0xff]  ;;  %v95_v12 = vlaneseq }
  0x2c   :  { %679 = vmatprep.subr.bf16.mxu0 %v678_v9  ;;  %v684_v20 = vpack.c.bf16 %v60_v17, %v57_v16  ;;  %v686_v21 = vpack.c.bf16 %v67_v19, %v64_v18  ;;  %v63_v22 = vld [vmem:[#allocation5 + $0x90] sm:$0xff]  ;;  %v66_v23 = vld [vmem:[#allocation5 + $0xa8] sm:$0xff]  ;;  %v73_v25 = vld [vmem:[#allocation5 + $0xe0] sm:$0xff] }
  0x2d   :  { %v70_v24 = vld [vmem:[#allocation5 + $0xc8] sm:$0xff]  ;;  %v884_v26 = vld [vmem:[#allocation2] sm:$0xff]  ;;  %v688_v29 = vpack.c.bf16 %v66_v23, %v63_v22  ;;  %v69_v30 = vld [vmem:[#allocation5 + $0xc0] sm:$0xff]  ;;  %v96_v13 = vshrl.u32 %v95_v12, 7 }
  0x2e   :  { %v47_v27 = vld [vmem:[#allocation5 + $0x10] sm:$0xff]  ;;  %v50_v28 = vld [vmem:[#allocation5 + $0x28] sm:$0xff]  ;;  %651 = vmatprep.mubr.f32.mxu1 %v884_v26  ;;  %v53_v32 = vld [vmem:[#allocation5 + $0x40] sm:$0xff]  ;;  %v690_v34 = vpack.c.bf16 %v73_v25, %v70_v24 }
  0x2f   :  { %681 = vmatpush1.bf16.msra.mxu0 %v680_v14  ;;  %v706_v31 = vpack.c.bf16 %v50_v28, %v47_v27  ;;  %v56_v33 = vld [vmem:[#allocation5 + $0x58] sm:$0xff]  ;;  %v59_v37 = vld [vmem:[#allocation5 + $0x70] sm:$0xff]  ;;  %v62_v38 = vld [vmem:[#allocation5 + $0x88] sm:$0xff]  ;;  %v101_v14 = vsub.s32 1, %v96_v13  ;;  %v97_v16 = vsub.s32 0, %v96_v13  ;;  %v105_v23 = vsub.s32 2, %v96_v13 }
  0x30   :  { %683 = vmatprep.subr.bf16.mxu0 %v682_v15  ;;  %v72_v35 = vld [vmem:[#allocation5 + $0xd8] sm:$0xff]  ;;  %v710_v36 = vpack.c.bf16 %v56_v33, %v53_v32  ;;  %v79_v40 = vld [vmem:[#allocation5 + $0x110] sm:$0xff]  ;;  %v714_v43 = vpack.c.bf16 %v62_v38, %v59_v37  ;;  %v78_v45 = vld [vmem:[#allocation5 + $0x108] sm:$0xff] }
  0x31   :  { %v76_v39 = vld [vmem:[#allocation5 + $0xf8] sm:$0xff]  ;;  %707 = vmatprep.subr.bf16.mxu1 %v706_v31  ;;  %v692_v41 = vpack.c.bf16 %v72_v35, %v69_v30  ;;  %v75_v42 = vld [vmem:[#allocation5 + $0xf0] sm:$0xff]  ;;  %v65_v46 = vld [vmem:[#allocation5 + $0xa0] sm:$0xff] }
  0x32   :  { %709 = vmatpush3.bf16.msra.mxu1 %v706_v31  ;;  %v694_v44 = vpack.c.bf16 %v79_v40, %v76_v39  ;;  %v68_v47 = vld [vmem:[#allocation5 + $0xb8] sm:$0xff]  ;;  %v82_v48 = vld [vmem:[#allocation5 + $0x128] sm:$0xff]  ;;  %v85_v49 = vld [vmem:[#allocation5 + $0x140] sm:$0xff]  ;;  %v696_v50 = vpack.c.bf16 %v78_v45, %v75_v42 }
  0x33   :  { %685 = vmatpush1.bf16.msra.mxu0 %v684_v20  ;;  %711 = vmatprep.subr.bf16.mxu1 %v710_v36  ;;  %v81_v51 = vld [vmem:[#allocation5 + $0x120] sm:$0xff]  ;;  %v718_v52 = vpack.c.bf16 %v68_v47, %v65_v46  ;;  %v698_v53 = vpack.c.bf16 %v85_v49, %v82_v48  ;;  %v84_v54 = vld [vmem:[#allocation5 + $0x138] sm:$0xff]  ;;  %v71_v55 = vld [vmem:[#allocation5 + $0xd0] sm:$0xff] }
  0x34   :  { %687 = vmatprep.subr.bf16.mxu0 %v686_v21  ;;  %v74_v56 = vld [vmem:[#allocation5 + $0xe8] sm:$0xff]  ;;  %v88_v57 = vld [vmem:[#allocation5 + $0x158] sm:$0xff]  ;;  %v91_v58 = vld [vmem:[#allocation5 + $0x170] sm:$0xff]  ;;  %v700_v59 = vpack.c.bf16 %v84_v54, %v81_v51 }
  0x35   :  { %v87_v60 = vld [vmem:[#allocation5 + $0x150] sm:$0xff]  ;;  %v722_v61 = vpack.c.bf16 %v74_v56, %v71_v55  ;;  %v702_v62 = vpack.c.bf16 %v91_v58, %v88_v57  ;;  %v90_v63 = vld [vmem:[#allocation5 + $0x168] sm:$0xff]  ;;  %v77_v1 = vld [vmem:[#allocation5 + $0x100] sm:$0xff] }
  0x36   :  { %713 = vmatpush3.bf16.msra.mxu1 %v710_v36  ;;  %v80_v2 = vld [vmem:[#allocation5 + $0x118] sm:$0xff]  ;;  %v704_v3 = vpack.c.bf16 %v90_v63, %v87_v60  ;;  %v83_v5 = vld [vmem:[#allocation5 + $0x130] sm:$0xff]  ;;  %v86_v6 = vld [vmem:[#allocation5 + $0x148] sm:$0xff] }
  0x37   :  { %689 = vmatpush1.bf16.msra.mxu0 %v688_v29  ;;  %715 = vmatprep.subr.bf16.mxu1 %v714_v43  ;;  %v726_v4 = vpack.c.bf16 %v80_v2, %v77_v1  ;;  %v730_v7 = vpack.c.bf16 %v86_v6, %v83_v5  ;;  %v89_v8 = vld [vmem:[#allocation5 + $0x160] sm:$0xff]  ;;  %v92_v9 = vld [vmem:[#allocation5 + $0x178] sm:$0xff]  ;;  %v93_v15 = vld [vmem:[%s927_s2] sm:$0x7]  ;;  %s835_s2 = smov [#allocation7]  }
  0x38   :  { %691 = vmatprep.subr.bf16.mxu0 %v690_v34  ;;  %v44_v10 = vld [vmem:[#allocation2 + $0x8] sm:$0xff]  ;;  %v734_v11 = vpack.c.bf16 %v92_v9, %v89_v8  ;;  %v102_v17 = vrot.slane %v93_v15, %v101_v14  ;;  %v98_v19 = vrot.slane %v93_v15, %v97_v16  ;;  %v106_v27 = vrot.slane %v93_v15, %v105_v23  ;;  %s578_s13 = sshll.u32 %s835_s2, 4  ;;  %s579_s13 = int_to_ptr.vmem [resolvable:$true] %s578_s13 }
  0x39   :  { %s799_s14 = scalar_lea.vmem %s579_s13, 256  ;;  %p804_p3 = scmp.lt.s32.totalorder %s579_s13, %s579_s13 }
  0x3a   :  { %717 = vmatpush3.bf16.msra.mxu1 %v714_v43  ;;  %p800_p2 = scmp.ne.s32.totalorder %s579_s13, %s799_s14  ;;  %p805_p4 = scmp.lt.s32.totalorder %s799_s14, %s799_s14 }
  0x3b   :  { %693 = vmatpush1.bf16.msra.mxu0 %v692_v41  ;;  %719 = vmatprep.subr.bf16.mxu1 %v718_v52 }
  0x3c   :  { %695 = vmatprep.subr.bf16.mxu0 %v694_v44  ;;  %p806_p5 = por %p805_p4, %p804_p3 }
  0x3e   :  { %721 = vmatpush3.bf16.msra.mxu1 %v718_v52  ;;  %p807_p6 = pnand %p806_p5, %p800_p2 }
  0x3f   :  { %697 = vmatpush1.bf16.msra.mxu0 %v696_v50  ;;  %723 = vmatprep.subr.bf16.mxu1 %v722_v61 }
  0x40   :  { %699 = vmatprep.subr.bf16.mxu0 %v698_v53 }
  0x42   :  { %725 = vmatpush3.bf16.msra.mxu1 %v722_v61 }
  0x43   :  { %701 = vmatpush1.bf16.msra.mxu0 %v700_v59  ;;  %727 = vmatprep.subr.bf16.mxu1 %v726_v4 }
  0x44   :  { %703 = vmatprep.subr.bf16.mxu0 %v702_v62 }
  0x46   :  { %729 = vmatpush3.bf16.msra.mxu1 %v726_v4 }
  0x47   :  { %705 = vmatpush1.bf16.msra.mxu0 %v704_v3  ;;  %731 = vmatprep.subr.bf16.mxu1 %v730_v7 }
  0x48   :  { %659 = vmatprep.subr.mxu0 %v833_v0 }
  0x4a   :  { %175 = vmatmul.mubr.f32.vlgmr.msra.gmra.mrb[0].mxu0 %v884_v26  ;;  %733 = vmatpush3.bf16.msra.mxu1 %v730_v7 }
  0x4b   :  { %180 = vmatprep.mubr.f32.mxu0 %v833_v0  ;;  %735 = vmatprep.subr.bf16.mxu1 %v734_v11 }
  0x4e   :  { %181 = vmatmul.mubr.f32.gmra.mrb[2].mxu0 %v44_v10  ;;  %737 = vmatpush3.bf16.msra.mxu1 %v734_v11 }
  0x4f   :  { %654 = vmatprep.subr.mxu1 %v833_v0  ;;  %661 = vmatprep.mubr.msk.f32.mxu0 %vm834_vm0, %v833_v0 }
  0x51   :  { %652 = vmatmul.mubr.f32.vlgmr.msra.gmra.mrb[0].mxu1 %v44_v10 }
  0x52   :  { %656 = vmatprep.mubr.msk.f32.mxu1 %vm834_vm0, %v833_v0 }
 0x11d   :  { %v176_v18 = vpop.f32.mrb[0].mxu0 }
 0x11e   :  { %v178_v20 = vpop.f32.mrb[1].mxu0  ;;  %v177_v24 = vadd.f32 %v176_v18, %v98_v19 }
 0x11f   :  { %v179_v21 = vadd.f32 %v178_v20, %v102_v17 }
 0x121   :  { %v182_v22 = vpop.f32.mrb[2].mxu0  ;;  %655 = vmatpush3.xpose.msra.mxu1 %v179_v21 }
 0x122   :  { %v184_v25 = vpop.f32.mrb[3].mxu0  ;;  %664 = vmatprep.subr.mxu1 %v833_v0  ;;  %v183_v28 = vadd.f32 %v182_v22, %v98_v19 }
 0x123   :  { %v185_v26 = vadd.f32 %v184_v25, %v102_v17 }
 0x124   :  { %657 = vmatmul.mubr.f32.vlgmr.msra.gmra.mrb[2].mxu1 %v177_v24  ;;  %v653_v29 = vpop.f32.mrb[0].mxu1 }
 0x125   :  { %660 = vmatpush3.xpose.msra.mxu0 %v185_v26  ;;  %666 = vmatprep.mubr.msk.f32.mxu1 %vm834_vm0, %v833_v0  ;;  %v259_v30 = vadd.f32 %v653_v29, %v106_v27  ;;  %v253_v31 = vpop.f32.mrb[1].mxu1 }
 0x126   :  { %669 = vmatprep.subr.mxu0 %v833_v0  ;;  %v254_v32 = vadd.f32 %v253_v31, %v106_v27 }
 0x128   :  { %662 = vmatmul.mubr.f32.vlgmr.msra.gmra.mrb[4].mxu0 %v183_v28  ;;  %665 = vmatpush3.msra.mxu1 %v254_v32 }
 0x129   :  { %671 = vmatprep.mubr.msk.f32.mxu0 %vm834_vm0, %v833_v0  ;;  %670 = vmatpush3.msra.mxu0 %v259_v30 }
 0x1f7   :  { %v328_v33 = vpop.f32.mrb[2].mxu1 }
 0x1f8   :  { %v658_v34 = vpop.f32.mrb[3].mxu1  ;;  %v403_v35 = vsel %vm402_vm1, %v328_v33, -inf }
 0x1f9   :  { %404 = vmax.xlane.f32.xlu0 %v403_v35 }
 0x1fb   :  { %v398_v36 = vpop.f32.mrb[4].mxu0 }
 0x1fc   :  { %v663_v37 = vpop.f32.mrb[5].mxu0  ;;  %v406_v38 = vsel %vm402_vm1, %v398_v36, -inf }
 0x1fd   :  { %407 = vmax.xlane.f32.xlu0 %v406_v38 }
 0x286   :  { %v405_v39 = vpop.xlane.xlu0 %404 }
 0x287   :  { %v409_v40 = vsub.f32 %v328_v33, %v405_v39 }
 0x289   :  { %v411_v41 = vmul.f32 1.442695, %v409_v40 }
 0x28a   :  { %v408_v42 = vpop.xlane.xlu0 %407 }
 0x28b   :  { %747 = vpow2.f32 %v411_v41  ;;  %v410_v0 = vsub.f32 %v398_v36, %v408_v42 }
 0x28d   :  { %v413_v43 = vmul.f32 1.442695, %v410_v0 }
 0x28f   :  { %749 = vpow2.f32 %v413_v43 }
 0x295   :  { %v748_v44 = vpop.eup %747 }
 0x296   :  { %667 = vmatmul.mubr.msk.f32.vlgmr.msra.gmra.mrb[4].mxu1 %vm402_vm1, %v748_v44  ;;  %v415_v45 = vsel %vm402_vm1, %v748_v44, 0.0 }
 0x297   :  { %416 = vadd.xlane.f32.xlu1 %v415_v45 }
 0x299   :  { %v750_v46 = vpop.eup %749 }
 0x29a   :  { %672 = vmatmul.mubr.msk.f32.vlgmr.msra.gmra.mrb[6].mxu0 %vm402_vm1, %v750_v46  ;;  %v418_v47 = vsel %vm402_vm1, %v750_v46, 0.0 }
 0x29b   :  { %419 = vadd.xlane.f32.xlu1 %v418_v47 }
 0x324   :  { %v417_v48 = vpop.xlane.xlu1 %416 }
 0x325   :  { %751 = vrcp.f32 %v417_v48 }
 0x328   :  { %v420_v49 = vpop.xlane.xlu1 %419 }
 0x329   :  { %753 = vrcp.f32 %v420_v49 }
 0x32f   :  { %v752_v50 = vpop.eup %751 }
 0x333   :  { %v754_v54 = vpop.eup %753 }
 0x369   :  { %v490_v51 = vpop.f32.mrb[4].mxu1 }
 0x36a   :  { %v568_v52 = vmul.f32 %v752_v50, %v490_v51  ;;  %v668_v53 = vpop.f32.mrb[5].mxu1 }
 0x36c   :  { %571 = vst [vmem:[#allocation7] sm:$0xff] %v568_v52 }
 0x36d   :  { %v563_v55 = vpop.f32.mrb[6].mxu0 }
 0x36e   :  { %v570_v56 = vmul.f32 %v754_v54, %v563_v55  ;;  %v673_v57 = vpop.f32.mrb[7].mxu0 }
 0x370   :  { %572 = vst [vmem:[#allocation7 + $0x8] sm:$0xff] %v570_v56 }
 0x371   :  { %810 = shalt.err (!%p807_p6)
}
 0x372   :  { %s811_s17 = scalar_lea.hbm %s928_s3, 256 }
 0x373   :  { %p812_p7 = scmp.ne.s32.totalorder %s928_s3, %s811_s17  ;;  %p815_p8 = scmp.lt.u32.totalorder %s811_s17, %s928_s3 }
 0x375   :  { %p817_p9 = pnand %p815_p8, %p812_p7 }
 0x377   :  { %820 = shalt.err (!%p817_p9)
}
 0x378   :  { %584 = dma.vmem_to_hbm [thread:$0]  %s579_s13, 256, %s928_s3, [#allocation4], %s828_s22, %s828_s22, %s829_s23  }
 0x379   :  { %825 = dma.done.wait [#allocation4], 256  }
 0x37a   :  { %826 = vsyncadd [#allocation4], 4294967040 }
 0x37b   :  { %588 = vsyncpa [#allocation3], 1 }
 0x37c   :  { %589 = vsyncpa [#allocation6], 1 }
 0x37d   :  { %590 = vsyncpa [#allocation4], 1 }

</bundles_post_ra>
